<compile_context>
chip_gen: v5e
topology: v5e:2x2
jax: 0.10.0
libtpu: 0.0.40
codegen_flags: <defaults>
</compile_context>

<pallas_src>
import jax
import jax.numpy as jnp
from jax.experimental import pallas as pl
from jax.experimental.pallas import tpu as pltpu


def _pos_add_kernel(x_ref, pos_ref, o_ref):
    # x_ref:   (tB, tF) tile of the flattened activations
    # pos_ref: (1,  tF) tile of the flattened positional table (resident across
    #          the inner batch axis; Pallas skips re-DMA for an unchanged index)
    # Pure VPU broadcast add; cast handles any dtype promotion.
    o_ref[...] = (x_ref[...] + pos_ref[...]).astype(o_ref.dtype)


def _detect_generation() -> str:
    """Best-effort TPU generation detection from the device kind string."""
    try:
        kind = jax.devices()[0].device_kind.lower()
    except Exception:
        return "v6e"
    if "v7" in kind or "7x" in kind:
        return "v7x"
    if "v6" in kind:
        return "v6e"
    if "v5" in kind:
        return "v5e"
    return "v6e"


# Per-generation knobs: (target x-tile bytes per grid step, vmem_limit_bytes).
#   v5e: 128 MiB physical VMEM, ~820 GB/s HBM  -> modest tiles already amortize
#   v6e: 128 MiB physical VMEM, ~1.4 TB/s HBM
#   v7x:  64 MiB physical VMEM, ~3.2 TB/s HBM  -> biggest tiles, tighter limit
_GEN_PARAMS = {
    "v5e": (2 << 20, 64 << 20),
    "v6e": (4 << 20, 64 << 20),
    "v7x": (6 << 20, 48 << 20),
}


def _round_down_128(n: int) -> int:
    return (n // 128) * 128


def _round_up_128(n: int) -> int:
    return ((n + 127) // 128) * 128


def _plan_tiles(F: int, B: int, itemsize: int, gen: str):
    """Pick (tB, tF, vmem_limit_bytes) for the flattened (B, F) add."""
    target_x_bytes, vmem_limit = _GEN_PARAMS[gen]

    # Dtype-aware sublane tile: f32 -> 8, bf16 -> 16, int8/fp8 -> 32 rows.
    native = 8 * max(1, 4 // itemsize)
    tB = B if B <= native else native
    n_btiles = -(-B // tB)

    # VMEM bytes per lane of tF:
    #   x tile + out tile, double-buffered        : 2 * 2 * tB * itemsize
    #   pos tile, padded to 8 sublanes, dbl-buf   : 2 * 8 * itemsize
    per_lane = itemsize * (2 * 2 * tB + 2 * 8)
    budget = int(0.70 * vmem_limit)  # headroom for compiler scratch / metadata

    tf = target_x_bytes // (tB * itemsize)
    tf = min(tf, max(128, budget // per_lane))
    tf = max(_round_down_128(tf), 128)
    if tf >= F:
        tf = F  # full-lane block: always a legal shape, single F tile

    # v7x has 2 TensorCores: make sure a single-step grid is split over F so
    # both cores get work (no-op on v5e/v6e and at tiny shapes).
    if gen == "v7x" and tf >= F and n_btiles == 1 and F >= 256:
        tf = _round_up_128(-(-F // 2))
        if tf >= F:
            tf = F

    return tB, tf, vmem_limit


def learnable_positional_encoding(x: jax.Array, pos: jax.Array,
                                  *, donate_x: bool = False,
                                  pos_in_x_dtype: bool = False) -> jax.Array:
    """x: (B, S, E), pos: (S, E)  ->  (B, S, E) = x + pos (broadcast over B)."""
    B, S, E = x.shape
    assert pos.shape == (S, E), f"pos shape {pos.shape} != {(S, E)}"

    if pos_in_x_dtype and pos.dtype != x.dtype:
        # Optional (semantics change vs strict promotion): keep the output in
        # x.dtype, halving HBM write bytes when x is bf16 and pos is f32.
        pos = pos.astype(x.dtype)

    out_dtype = jnp.result_type(x.dtype, pos.dtype)
    itemsize = jnp.dtype(out_dtype).itemsize

    # Flatten to a lane-dense 2D problem: last dim F = S*E maps to lanes.
    F = S * E
    x2 = x.reshape(B, F)
    pos2 = pos.reshape(1, F)

    gen = _detect_generation()
    tB, tF, vmem_limit = _plan_tiles(F, B, itemsize, gen)

    # Grid: F tiles outer, batch tiles inner -> pos block index is constant
    # across consecutive (inner) steps, so it is never re-DMA'd within a column.
    grid = (-(-F // tF), -(-B // tB))

    cost = pl.CostEstimate(
        flops=B * F,
        transcendentals=0,
        bytes_accessed=(2 * B * F + F) * itemsize,
    )

    out2 = pl.pallas_call(
        _pos_add_kernel,
        out_shape=jax.ShapeDtypeStruct((B, F), out_dtype),
        grid_spec=pltpu.PrefetchScalarGridSpec(
            num_scalar_prefetch=0,
            grid=grid,
            in_specs=[
                # x tile: one (tB, tF) slab per grid step.
                pl.BlockSpec((tB, tF), lambda f, b: (b, f)),
                # pos tile: depends only on the F-tile index -> resident while
                # the inner batch axis iterates.
                pl.BlockSpec((1, tF), lambda f, b: (0, f)),
            ],
            out_specs=pl.BlockSpec((tB, tF), lambda f, b: (b, f)),
        ),
        compiler_params=pltpu.CompilerParams(
            # No reduction anywhere: both axes parallel (lets v7x shard the
            # grid across its 2 TensorCores; no-op on v5e/v6e).
            dimension_semantics=("parallel", "parallel"),
            vmem_limit_bytes=vmem_limit,
        ),
        cost_estimate=cost,
        # Optional in-place update when the caller donates x (dtypes match).
        # NOTE: aliases x2 (a reshape of x); only truly in-place if the caller
        # donates x at the jit boundary.
        input_output_aliases=({0: 0} if (donate_x and out_dtype == x.dtype) else {}),
    )(x2, pos2)

    return out2.reshape(B, S, E)


if __name__ == "__main__":
    embed_dim = 16
    seq_dim = 8
    batch = 2

    key = jax.random.PRNGKey(0)
    k_x, k_p = jax.random.split(key)

    # Input activations.
    x = jax.random.normal(k_x, (batch, seq_dim, embed_dim), dtype=jnp.float32)

    # Parameter init per nn.Parameter(torch.zeros(seq_dim, embed_dim)), then a
    # deterministic perturbation so the broadcast-add path is exercised.
    pos = jnp.zeros((seq_dim, embed_dim), dtype=jnp.float32)
    pos = pos + 0.01 * jax.random.normal(k_p, (seq_dim, embed_dim), dtype=jnp.float32)

    out = learnable_positional_encoding(x, pos)
    out = jax.block_until_ready(out)

    # Reference check against plain JAX broadcasting semantics.
    ref = x + pos[None, :, :]
    assert out.shape == (batch, seq_dim, embed_dim)
    assert out.dtype == ref.dtype
    assert jnp.allclose(out, ref, atol=1e-6), "mismatch vs reference"

    print("KERNEL_OK")
</pallas_src>

<mosaic_0001>
module attributes {stable_mosaic.version = 11 : i64} {
  func.func @_pos_add_kernel(%arg0: i32, %arg1: i32, %arg2: memref<2x128xf32, #tpu.memory_space<vmem>>, %arg3: memref<1x128xf32, #tpu.memory_space<vmem>>, %arg4: memref<2x128xf32, #tpu.memory_space<vmem>>) attributes {dimension_semantics = [#tpu.dimension_semantics<parallel>, #tpu.dimension_semantics<parallel>], iteration_bounds = array<i64: 1, 1>, scalar_prefetch = 0 : i64, scratch_operands = 0 : i64, tpu.core_type = #tpu.core_type<tc>, window_params = [{transform_indices = @transform_0, window_bounds = array<i64: 2, 128>}, {transform_indices = @transform_1, window_bounds = array<i64: 1, 128>}, {transform_indices = @transform_2, window_bounds = array<i64: 2, 128>}]} {
    %c0 = arith.constant 0 : index
    %c0_0 = arith.constant 0 : index
    %0 = vector.load %arg2[%c0, %c0_0] : memref<2x128xf32, #tpu.memory_space<vmem>>, vector<2x128xf32>
    %c0_1 = arith.constant 0 : index
    %c0_2 = arith.constant 0 : index
    %1 = vector.load %arg3[%c0_1, %c0_2] : memref<1x128xf32, #tpu.memory_space<vmem>>, vector<1x128xf32>
    %2 = vector.broadcast %1 : vector<1x128xf32> to vector<2x128xf32>
    %3 = arith.addf %0, %2 : vector<2x128xf32>
    %c0_3 = arith.constant 0 : index
    %c0_4 = arith.constant 0 : index
    %4 = vector.load %arg4[%c0_3, %c0_4] : memref<2x128xf32, #tpu.memory_space<vmem>>, vector<2x128xf32>
    tpu.vector_store %arg4[%c0_3, %c0_4], %3 {strides = array<i32>} : memref<2x128xf32, #tpu.memory_space<vmem>>, vector<2x128xf32>,
    return
  }
  func.func @transform_0(%arg0: i32, %arg1: i32) -> (i32, i32) {
    %c0_i32 = arith.constant 0 : i32
    return %arg1, %arg0 : i32, i32
  }
  func.func @transform_1(%arg0: i32, %arg1: i32) -> (i32, i32) {
    %c0_i32 = arith.constant 0 : i32
    %c0_i32_0 = arith.constant 0 : i32
    return %c0_i32, %arg0 : i32, i32
  }
  func.func @transform_2(%arg0: i32, %arg1: i32) -> (i32, i32) {
    %c0_i32 = arith.constant 0 : i32
    return %arg1, %arg0 : i32, i32
  }
}

</mosaic_0001>

<bundles_post_ra>
// kernel: tpu_custom_call.1
= control target key start
LH: loop header
LB: loop body
LE: loop exit
PB: predicated region body
PF: predicated region fallthrough
CT: control target
= control target key end

     0   :  { %7 = vsyncpa [#allocation3], 0  ;;  %s174_s0 = inlined_call_operand.hbm [shape: f32[2,128], index: 0, kind: input, shape index: {}]   ;;  %s175_s1 = inlined_call_operand.hbm [shape: f32[1,128], index: 1, kind: input, shape index: {}]   ;;  %s176_s2 = inlined_call_operand.hbm [shape: f32[2,128], index: 2, kind: output, shape index: {}]  }
   0x1   :  { %8 = vsyncpa [#allocation6], 0 }
   0x2   :  { %9 = vsyncpa [#allocation4], 0  ;;  %s15_s11 = sshll.u32 %s174_s0, 4  ;;  %s147_s12 = smov [#allocation2]   ;;  %s16_s11 = int_to_ptr.hbm [resolvable:$true] %s15_s11 }
   0x3   :  { %s17_s13 = sshll.u32 %s147_s12, 4  ;;  %s26_s16 = sshll.u32 %s175_s1, 4  ;;  %s18_s13 = int_to_ptr.vmem [resolvable:$true] %s17_s13  ;;  %s27_s16 = int_to_ptr.hbm [resolvable:$true] %s26_s16 }
   0x4   :  { %20 = dma.hbm_to_vmem [thread:$0]  %s16_s11, 32, %s18_s13, [#allocation3]  }
   0x5   :  { %s148_s17 = smov [#allocation5]  }
   0x6   :  { %s28_s18 = sshll.u32 %s148_s17, 4  ;;  %s29_s18 = int_to_ptr.vmem [resolvable:$true] %s28_s18 }
   0x7   :  { %31 = dma.hbm_to_vmem [thread:$0]  %s27_s16, 16, %s29_s18, [#allocation6]  }
   0x8   :  { %141 = dma.done.wait [#allocation3], 32  }
   0x9   :  { %142 = vsyncadd [#allocation3], 4294967264 }
   0xa   :  { %143 = dma.done.wait [#allocation6], 16  }
   0xb   :  { %144 = vsyncadd [#allocation6], 4294967280  ;;  %s149_s19 = smov [#allocation7]   ;;  %s54_s22 = sshll.u32 %s176_s2, 4  ;;  %v40_v0 = vld [vmem:[#allocation2] sm:$0x3]  ;;  %s55_s22 = int_to_ptr.hbm [resolvable:$true] %s54_s22 }
   0xc   :  { %s52_s0 = sshll.u32 %s149_s19, 4  ;;  %v68_v1 = vld [vmem:[#allocation5] ss:$0 sm:$0xff]  ;;  %s53_s0 = int_to_ptr.vmem [resolvable:$true] %s52_s0 }
   0xd   :  { %v45_v2 = vadd.f32 %v68_v1, %v40_v0 }
   0xf   :  { %46 = vst [vmem:[#allocation7] sm:$0x3] %v45_v2 }
  0x10   :  { %57 = dma.vmem_to_hbm [thread:$0]  %s53_s0, 32, %s55_s22, [#allocation4]  }
  0x11   :  { %145 = dma.done.wait [#allocation4], 32  }
  0x12   :  { %146 = vsyncadd [#allocation4], 4294967264 }
  0x13   :  { %62 = vsyncpa [#allocation3], 1 }
  0x14   :  { %63 = vsyncpa [#allocation6], 1 }
  0x15   :  { %64 = vsyncpa [#allocation4], 1 }

</bundles_post_ra>
